<compile_context>
chip_gen: v7x
topology: tpu7x:2x2x1
jax: 0.10.0
libtpu: 0.0.40
codegen_flags: <defaults>
</compile_context>

<pallas_src>
import functools

import jax
import jax.numpy as jnp
from jax import lax
from jax.experimental import pallas as pl
from jax.experimental.pallas import tpu as pltpu


# ----------------------------------------------------------------------------
# Kernel: projection + abs-pos attention for one (batch, head) grid point.
# ----------------------------------------------------------------------------
def attn_head_kernel(x_ref, wqk_ref, wv_ref, emb_ref, o_ref, *, dim_head,
                     compute_dtype):
    cd = compute_dtype
    d = dim_head
    n = x_ref.shape[-1]

    x = x_ref[...].astype(cd)        # (c, n)  channels-first activation view
    wqk = wqk_ref[...].astype(cd)    # (2d, c) rows = [q_h (pre-scaled) ; k_h]
    wv = wv_ref[...].astype(cd)      # (d, c)
    emb_t = emb_ref[...]             # (d, n)  AbsPosEmb table, f32, pre-transposed

    # 1x1-conv projection for this head, directly in (row, pixel) layout.
    qk = jnp.dot(wqk, x, preferred_element_type=jnp.float32)        # (2d, n) f32
    v_t = jnp.dot(wv, x, preferred_element_type=jnp.float32)        # (d, n)  f32

    # Sublane slices at multiples of dim_head -> free views.
    q = qk[:d, :]                    # (d, n), already scaled by dim_head**-0.5
    ke = qk[d:, :] + emb_t           # (d, n), fused content + abs-pos key

    # sim[i, j] = sum_d q[d, i] * (k + emb)[d, j]   (single MXU pass)
    sim = lax.dot_general(q.astype(cd), ke.astype(cd),
                          (((0,), (0,)), ((), ())),
                          preferred_element_type=jnp.float32)       # (n, n) f32

    # Row softmax kept in f32; 1/l normalization deferred to the (d, n) output.
    m = jnp.max(sim, axis=-1, keepdims=True)
    p = jnp.exp(sim - m).astype(cd)                                 # unnormalized probs

    # attn @ v plus the softmax row sums in one MXU pass: append a ones row to v^T.
    v_ext = jnp.concatenate([v_t.astype(cd), jnp.ones((1, n), dtype=cd)],
                            axis=0)                                 # (d+1, n)
    out_ext = lax.dot_general(v_ext, p,
                              (((1,), (1,)), ((), ())),             # contract over key j
                              preferred_element_type=jnp.float32)   # (d+1, n) f32

    inv_l = pl.reciprocal(out_ext[d:d + 1, :], approx=False)        # (1, n) exact
    o_ref[...] = (out_ext[:d, :] * inv_l).astype(o_ref.dtype)       # (d, n)


def fused_attention(x_cn, w_qk_t, w_v_t, emb_t, *, heads, dim_head,
                    compute_dtype, out_dtype):
    b, c, n = x_cn.shape
    inner = heads * dim_head
    d = dim_head

    kern = functools.partial(attn_head_kernel, dim_head=d,
                             compute_dtype=compute_dtype)

    # Advisory cost estimate so XLA schedules around the call sensibly.
    flops = int(b * heads * (2 * (2 * d) * c * n        # q/k projection
                             + 2 * d * c * n            # v projection
                             + 2 * n * n * d            # logits
                             + 2 * n * n * (d + 1)))    # attn @ v (+ row sums)
    transcendentals = int(b * heads * n * n)            # exp
    bytes_accessed = int(b * heads * c * n * x_cn.dtype.itemsize
                         + (w_qk_t.size + w_v_t.size + emb_t.size) * 4
                         + b * inner * n * jnp.dtype(out_dtype).itemsize)

    return pl.pallas_call(
        kern,
        out_shape=jax.ShapeDtypeStruct((b, inner, n), out_dtype),
        grid_spec=pl.GridSpec(
            # head axis fastest -> the activation block is re-used across head steps.
            grid=(b, heads),
            in_specs=[
                # Activation: one layout only, free reshape of NCHW.
                pl.BlockSpec((pl.Squeezed(), c, n), lambda i, h: (i, 0, 0)),
                # Per-head q/k weight rows (sublane-axis slicing via the index_map).
                pl.BlockSpec((2 * d, c), lambda i, h: (h, 0)),
                # Per-head v weight rows.
                pl.BlockSpec((d, c), lambda i, h: (h, 0)),
                # AbsPosEmb table: constant index_map -> VMEM-resident across steps.
                pl.BlockSpec((d, n), lambda i, h: (0, 0)),
            ],
            out_specs=pl.BlockSpec((pl.Squeezed(), d, n), lambda i, h: (i, h, 0)),
        ),
        compiler_params=pltpu.CompilerParams(
            dimension_semantics=("parallel", "parallel"),
            vmem_limit_bytes=32 * 1024 * 1024),
        cost_estimate=pl.CostEstimate(flops=flops,
                                      transcendentals=transcendentals,
                                      bytes_accessed=bytes_accessed),
    )(x_cn, w_qk_t, w_v_t, emb_t)


# ----------------------------------------------------------------------------
# Full forward (one-time layout / weight-folding glue in the wrapper).
# ----------------------------------------------------------------------------
def attention_forward(fmap, w_qkv, pos_height, pos_width, *, heads, dim_head,
                      compute_dtype=jnp.bfloat16, out_dtype=None):
    b, c, h, w = fmap.shape
    n = h * w
    inner = heads * dim_head
    scale = dim_head ** -0.5
    assert dim_head % 8 == 0, "dim_head must be a multiple of 8 (sublane tiling)"
    if out_dtype is None:
        out_dtype = fmap.dtype

    # Single activation layout: channels-first (c, n) -- a free reshape of NCHW.
    x_cn = fmap.reshape(b, c, n)

    # Per-head-interleaved, transposed q/k projection weight; softmax scale folded
    # into the q rows (one-time).  Row layout: [q_h0 | k_h0 | q_h1 | k_h1 | ...].
    w_q_t = (w_qkv[:, :inner] * scale).T.reshape(heads, dim_head, c)
    w_k_t = w_qkv[:, inner:2 * inner].T.reshape(heads, dim_head, c)
    w_qk_t = jnp.concatenate([w_q_t, w_k_t], axis=1).reshape(heads * 2 * dim_head, c)
    w_v_t = w_qkv[:, 2 * inner:].T                                   # (inner, c)

    # AbsPosEmb: emb[(x, y), d] = height[x, d] + width[y, d], pre-transposed -> (d, n).
    emb_t = (pos_height[:, None, :] + pos_width[None, :, :]).reshape(n, dim_head).T

    out = fused_attention(x_cn, w_qk_t, w_v_t, emb_t, heads=heads, dim_head=dim_head,
                          compute_dtype=compute_dtype, out_dtype=out_dtype)  # (b, h*d, n)
    # 'b (h d) (x y) -> b (h d) x y' : pure reshape, no data movement.
    return out.reshape(b, inner, h, w)


# ----------------------------------------------------------------------------
# Pure-JAX reference (mirrors the PyTorch math) for the correctness check.
# ----------------------------------------------------------------------------
def attention_reference(fmap, w_qkv, pos_height, pos_width, *, heads, dim_head):
    b, c, h, w = fmap.shape
    n = h * w
    inner = heads * dim_head
    scale = dim_head ** -0.5

    x = jnp.transpose(fmap, (0, 2, 3, 1)).reshape(b, n, c)
    qkv = x @ w_qkv

    def split_heads(t):
        return jnp.transpose(t.reshape(b, n, heads, dim_head), (0, 2, 1, 3))

    q = split_heads(qkv[..., :inner]) * scale
    k = split_heads(qkv[..., inner:2 * inner])
    v = split_heads(qkv[..., 2 * inner:])

    emb = (pos_height[:, None, :] + pos_width[None, :, :]).reshape(n, dim_head)
    sim = jnp.einsum('bhid,bhjd->bhij', q, k) + jnp.einsum('bhid,jd->bhij', q, emb)
    attn = jax.nn.softmax(sim, axis=-1)
    out = jnp.einsum('bhij,bhjd->bhid', attn, v)
    return jnp.transpose(out, (0, 1, 3, 2)).reshape(b, inner, h, w)


if __name__ == "__main__":
    # Small shapes consistent with the module.  fmap 16x16 -> n = 256 keeps the lane
    # axis dense (multiple of 128); the kernel also works for other fmap sizes.
    batch, dim, fmap_hw = 2, 8, 16
    heads, dim_head = 2, 32
    inner = heads * dim_head
    scale = dim_head ** -0.5

    key = jax.random.PRNGKey(0)
    k_fmap, k_w, k_h, k_wd = jax.random.split(key, 4)

    fmap = jax.random.normal(k_fmap, (batch, dim, fmap_hw, fmap_hw), dtype=jnp.float32)
    # to_qkv: Conv2d(dim, 3*inner, 1, bias=False) -> per-pixel matmul weight (dim, 3*inner)
    w_qkv = jax.random.normal(k_w, (dim, 3 * inner), dtype=jnp.float32) * 0.1
    # AbsPosEmb parameters
    pos_height = jax.random.normal(k_h, (fmap_hw, dim_head), dtype=jnp.float32) * scale
    pos_width = jax.random.normal(k_wd, (fmap_hw, dim_head), dtype=jnp.float32) * scale

    ref = attention_reference(fmap, w_qkv, pos_height, pos_width,
                              heads=heads, dim_head=dim_head)

    # f32 MXU-input path (closest to the PyTorch module numerics).
    out_f32 = attention_forward(fmap, w_qkv, pos_height, pos_width,
                                heads=heads, dim_head=dim_head,
                                compute_dtype=jnp.float32)
    out_f32 = jax.block_until_ready(out_f32)
    assert out_f32.shape == (batch, inner, fmap_hw, fmap_hw)
    assert jnp.allclose(out_f32, ref, atol=2e-3, rtol=2e-3), "f32 path mismatch vs reference"

    # Default bf16 MXU-input path (native MXU rate; f32 accumulation, f32 softmax).
    out_bf16 = attention_forward(fmap, w_qkv, pos_height, pos_width,
                                 heads=heads, dim_head=dim_head)
    out_bf16 = jax.block_until_ready(out_bf16)
    assert out_bf16.shape == (batch, inner, fmap_hw, fmap_hw)
    assert jnp.allclose(out_bf16, ref, atol=3e-2, rtol=3e-2), "bf16 path mismatch vs reference"

    print("KERNEL_OK")
</pallas_src>

<mosaic_0001>
module attributes {stable_mosaic.version = 11 : i64} {
  func.func @attn_head_kernel(%arg0: i32, %arg1: i32, %arg2: memref<1x8x256xf32, #tpu.memory_space<vmem>>, %arg3: memref<64x8xf32, #tpu.memory_space<vmem>>, %arg4: memref<32x8xf32, #tpu.memory_space<vmem>>, %arg5: memref<32x256xf32, #tpu.memory_space<vmem>>, %arg6: memref<1x32x256xf32, #tpu.memory_space<vmem>>) attributes {dimension_semantics = [#tpu.dimension_semantics<parallel>, #tpu.dimension_semantics<parallel>], iteration_bounds = array<i64: 2, 2>, scalar_prefetch = 0 : i64, scratch_operands = 0 : i64, tpu.core_type = #tpu.core_type<tc>, window_params = [{transform_indices = @transform_0, window_bounds = array<i64: 1, 8, 256>}, {transform_indices = @transform_1, window_bounds = array<i64: 64, 8>}, {transform_indices = @transform_2, window_bounds = array<i64: 32, 8>}, {pipeline_mode = #tpu.pipeline_mode<synchronous>, transform_indices = @transform_3, window_bounds = array<i64: 32, 256>}, {transform_indices = @transform_4, window_bounds = array<i64: 1, 32, 256>}]} {
    %c0 = arith.constant 0 : index
    %c0_0 = arith.constant 0 : index
    %c0_1 = arith.constant 0 : index
    %0 = vector.load %arg2[%c0, %c0_0, %c0_1] : memref<1x8x256xf32, #tpu.memory_space<vmem>>, vector<1x8x256xf32>
    %1 = vector.shape_cast %0 : vector<1x8x256xf32> to vector<8x256xf32>
    %c0_2 = arith.constant 0 : index
    %c0_3 = arith.constant 0 : index
    %2 = vector.load %arg3[%c0_2, %c0_3] : memref<64x8xf32, #tpu.memory_space<vmem>>, vector<64x8xf32>
    %c0_4 = arith.constant 0 : index
    %c0_5 = arith.constant 0 : index
    %3 = vector.load %arg4[%c0_4, %c0_5] : memref<32x8xf32, #tpu.memory_space<vmem>>, vector<32x8xf32>
    %c0_6 = arith.constant 0 : index
    %c0_7 = arith.constant 0 : index
    %4 = vector.load %arg5[%c0_6, %c0_7] : memref<32x256xf32, #tpu.memory_space<vmem>>, vector<32x256xf32>
    %cst = arith.constant dense<0.000000e+00> : vector<64x256xf32>
    %5 = tpu.matmul %2, %1, %cst {dimension_numbers = #tpu.dot_dimension_numbers<[1], [0], [0], [1], [0, 0, 1, 1], [], []>} : vector<64x8xf32>, vector<8x256xf32>, vector<64x256xf32> -> vector<64x256xf32>
    %cst_8 = arith.constant dense<0.000000e+00> : vector<32x256xf32>
    %6 = tpu.matmul %3, %1, %cst_8 {dimension_numbers = #tpu.dot_dimension_numbers<[1], [0], [0], [1], [0, 0, 1, 1], [], []>} : vector<32x8xf32>, vector<8x256xf32>, vector<32x256xf32> -> vector<32x256xf32>
    %7 = vector.extract_strided_slice %5 {offsets = [0, 0], sizes = [32, 256], strides = [1, 1]} : vector<64x256xf32> to vector<32x256xf32>
    %8 = vector.extract_strided_slice %5 {offsets = [32, 0], sizes = [32, 256], strides = [1, 1]} : vector<64x256xf32> to vector<32x256xf32>
    %9 = arith.addf %8, %4 : vector<32x256xf32>
    %cst_9 = arith.constant dense<0.000000e+00> : vector<256x256xf32>
    %10 = tpu.matmul %7, %9, %cst_9 {dimension_numbers = #tpu.dot_dimension_numbers<[0], [0], [1], [1], [0, 1, 1, 1], [], []>} : vector<32x256xf32>, vector<32x256xf32>, vector<256x256xf32> -> vector<256x256xf32>
    %cst_10 = arith.constant dense<0xFF800000> : vector<256xf32>
    %11 = vector.multi_reduction <maximumf>, %10, %cst_10 [1] : vector<256x256xf32> to vector<256xf32>
    %12 = vector.shape_cast %11 : vector<256xf32> to vector<256x1xf32>
    %13 = vector.broadcast %12 : vector<256x1xf32> to vector<256x256xf32>
    %14 = arith.subf %10, %13 : vector<256x256xf32>
    %15 = math.exp %14 : vector<256x256xf32>
    %cst_11 = arith.constant 1.000000e+00 : f32
    %16 = vector.broadcast %cst_11 : f32 to vector<1x256xf32>
    %17 = tpu.concatenate %6, %16 in 0 : vector<32x256xf32>, vector<1x256xf32> -> vector<33x256xf32>
    %cst_12 = arith.constant dense<0.000000e+00> : vector<33x256xf32>
    %18 = tpu.matmul %17, %15, %cst_12 {dimension_numbers = #tpu.dot_dimension_numbers<[1], [1], [0], [0], [0, 0, 1, 0], [], []>} : vector<33x256xf32>, vector<256x256xf32>, vector<33x256xf32> -> vector<33x256xf32>
    %19 = vector.extract_strided_slice %18 {offsets = [32, 0], sizes = [1, 256], strides = [1, 1]} : vector<33x256xf32> to vector<1x256xf32>
    %20 = tpu.reciprocal %19 : vector<1x256xf32> -> vector<1x256xf32>
    %21 = vector.extract_strided_slice %18 {offsets = [0, 0], sizes = [32, 256], strides = [1, 1]} : vector<33x256xf32> to vector<32x256xf32>
    %22 = vector.broadcast %20 : vector<1x256xf32> to vector<32x256xf32>
    %23 = arith.mulf %21, %22 : vector<32x256xf32>
    %c0_13 = arith.constant 0 : index
    %c0_14 = arith.constant 0 : index
    %c0_15 = arith.constant 0 : index
    %24 = vector.load %arg6[%c0_13, %c0_14, %c0_15] : memref<1x32x256xf32, #tpu.memory_space<vmem>>, vector<1x32x256xf32>
    %25 = vector.shape_cast %24 : vector<1x32x256xf32> to vector<32x256xf32>
    %26 = vector.shape_cast %23 : vector<32x256xf32> to vector<1x32x256xf32>
    tpu.vector_store %arg6[%c0_13, %c0_14, %c0_15], %26 {strides = array<i32>} : memref<1x32x256xf32, #tpu.memory_space<vmem>>, vector<1x32x256xf32>,
    return
  }
  func.func @transform_0(%arg0: i32, %arg1: i32) -> (i32, i32, i32) {
    %c0_i32 = arith.constant 0 : i32
    %c0_i32_0 = arith.constant 0 : i32
    %c0_i32_1 = arith.constant 0 : i32
    return %arg0, %c0_i32, %c0_i32_0 : i32, i32, i32
  }
  func.func @transform_1(%arg0: i32, %arg1: i32) -> (i32, i32) {
    %c0_i32 = arith.constant 0 : i32
    %c0_i32_0 = arith.constant 0 : i32
    return %arg1, %c0_i32 : i32, i32
  }
  func.func @transform_2(%arg0: i32, %arg1: i32) -> (i32, i32) {
    %c0_i32 = arith.constant 0 : i32
    %c0_i32_0 = arith.constant 0 : i32
    return %arg1, %c0_i32 : i32, i32
  }
  func.func @transform_3(%arg0: i32, %arg1: i32) -> (i32, i32) {
    %c0_i32 = arith.constant 0 : i32
    %c0_i32_0 = arith.constant 0 : i32
    %c0_i32_1 = arith.constant 0 : i32
    return %c0_i32, %c0_i32_0 : i32, i32
  }
  func.func @transform_4(%arg0: i32, %arg1: i32) -> (i32, i32, i32) {
    %c0_i32 = arith.constant 0 : i32
    %c0_i32_0 = arith.constant 0 : i32
    return %arg0, %arg1, %c0_i32 : i32, i32, i32
  }
}

</mosaic_0001>

<bundles_post_ra>
// kernel: tpu_custom_call.1
= control target key start
LH: loop header
LB: loop body
LE: loop exit
PB: predicated region body
PF: predicated region fallthrough
CT: control target
= control target key end

     0   :  { %9 = vsyncpa [#allocation3], 0  ;;  %s2481_s0 = inlined_call_operand.vmem [shape: f32[2,8,256], index: 0, kind: input, shape index: {}]   ;;  %s2482_s1 = inlined_call_operand.vmem [shape: f32[128,8], index: 1, kind: input, shape index: {}]   ;;  %s2483_s2 = inlined_call_operand.vmem [shape: f32[64,8], index: 2, kind: input, shape index: {}]   ;;  %s2484_s3 = inlined_call_operand.vmem [shape: f32[32,256], index: 3, kind: input, shape index: {}]   ;;  %s2485_s4 = inlined_call_operand.hbm [shape: f32[2,64,256], index: 4, kind: output, shape index: {}]  }
   0x1   :  { %11 = vsyncpa [#allocation3 + $0x1], 0  ;;  %s1938_s15 = smov 0   ;;  %s1940_s16 = smov 0  }
   0x2   :  { %s1942_s17 = smov 0   ;;  %s1944_s18 = smov 0  }
   0x3   :  { %s1946_s19 = smov 0   ;;  %s1948_s20 = smov 0  }
   0x4   :  { %s1950_s21 = smov 0   ;;  %s1952_s22 = smov 0  }
   0x5 LB: > { %s1468_s23 = sadd.s32 4294967295, %s1906_s22   ;;  %s1469_s24 = sadd.s32 4294967294, %s1906_s22   ;;  %s1906_s22 = sphi %s1952_s22, %s17_s22   ;;  %s1902_s21 = sphi %s1950_s21, %s2547_s21   ;;  %s1898_s20 = sphi %s1948_s20, %s2546_s20   ;;  %s1894_s19 = sphi %s1946_s19, %s2545_s19   ;;  %s1890_s18 = sphi %s1944_s18, %s2544_s18   ;;  %s1886_s17 = sphi %s1942_s17, %s2543_s17   ;;  %s1882_s16 = sphi %s1940_s16, %s2542_s16   ;;  %s1878_s15 = sphi %s1938_s15, %s2541_s15  }
   0x6   : > { %s26_s25 = sadd.s32 1, %s1898_s20  ;;  %s29_s26 = sadd.s32 1, %s1902_s21 }
   0x7   : > { %p27_p0 = scmp.ge.s32.totalorder %s26_s25, 2  ;;  %p147_p1 = scmp.ne.s32.totalorder %s1886_s17, %s1882_s16 }
   0x8   : > { %p148_p2 = scmp.eq.s32.totalorder %s1468_s23, 3  ;;  %p153_p5 = scmp.ne.s32.totalorder %s1882_s16, %s1878_s15 }
   0x9   : > { %s2549_s25 = smov (%p27_p0, %s26_s25), 0  ;;  %s2551_s26 = smov (!%p27_p0, %s29_s26), %s1902_s21 }
   0xa   : > { %s133_s27 = ssub.s32 %s1898_s20, %s2549_s25  ;;  %p1989_p3 = por %p148_p2, %p147_p1 }
   0xb   : > { %p31_p4 = scmp.ge.s32.totalorder %s2551_s26, 2  ;;  %p154_p6 = scmp.eq.s32.totalorder %s1469_s24, 3 }
   0xc   : > { %p1472_p7 = scmp.ge.s32.totalorder %s1906_s22, 1  ;;  %p201_p9 = scmp.lt.s32.totalorder %s1906_s22, 5 }
   0xd   : > { %s2553_s26 = smov (%p31_p4, %s2551_s26), 0  ;;  %p1998_p8 = por %p154_p6, %p153_p5 }
   0xe   : > { %s132_s30 = ssub.s32 %s1902_s21, %s2553_s26  ;;  %s137_s5 = sadd.s32 1, %s1886_s17 }
   0xf   : > { %s134_s6 = sor.u32 %s133_s27, %s132_s30  ;;  %p202_p10 = pnand %p1472_p7, %p201_p9 }
  0x10   : > { %p135_p11 = scmp.eq.s32.totalorder %s134_s6, 0 }
  0x11   : > { %205 = sbr.rel (%p202_p10) target bundleno = 1142 (0x476), region = 36 }
  0x12   : > { %s2007_s7 = scalar_select %p135_p11, %s1886_s17, %s137_s5  }
  0x18   : > { %p237_p12 = scmp.lt.s32.totalorder %s1894_s19, 1  ;;  %s2011_s8 = sshll.u32 %s1890_s18, 3  ;;  %v1908_v0 = vmov 0.0   ;;  %vm277_vm0 = vcmask 64512   ;;  %v269_v23 = vld [vmem:[%s2484_s3] sm:$0xff]  ;;  %v270_v25 = vld [vmem:[%s2484_s3 + $0x8] sm:$0xff] }
  0x19   : > { %366 = vmatprep.mubr.f32.mxu0 %v1908_v0  ;;  %p243_p13 = scmp.lt.s32.totalorder %s2011_s8, 15  ;;  %491 = vmatprep.mubr.f32.mxu1 %v1908_v0  ;;  %s1478_s5 = sshll.u32 %s1890_s18, 2  ;;  %v271_v27 = vld [vmem:[%s2484_s3 + $0x10] sm:$0xff]  ;;  %v272_v29 = vld [vmem:[%s2484_s3 + $0x18] sm:$0xff]  ;;  %v273_v37 = vld [vmem:[%s2484_s3 + $0x20] sm:$0xff]  ;;  %vm588_vm1 = vcmask 261120  }
  0x1a   : > { %s238_s9 = scalar_select %p237_p12, %s1894_s19, 1  ;;  %v274_v39 = vld [vmem:[%s2484_s3 + $0x28] sm:$0xff]  ;;  %v275_v41 = vld [vmem:[%s2484_s3 + $0x30] sm:$0xff]  ;;  %v276_v43 = vld [vmem:[%s2484_s3 + $0x38] sm:$0xff] }
  0x1b   : > { %s244_s10 = scalar_select %p243_p13, %s2011_s8, 15 }
  0x1c   : > { %s1531_s11 = sshll.u32 %s238_s9, 4  ;;  %p249_p0 = scmp.lt.s32.totalorder %s1478_s5, 7 }
  0x1d   : > { %s241_s14 = scalar_lea.vmem %s2481_s0, %s1531_s11  ;;  %s1477_s23 = sshll.u32 %s244_s10, 3 }
  0x1e   : > { %v256_v1 = vld [vmem:[%s241_s14 + $0x8] sm:$0xff]  ;;  %v255_v2 = vld [vmem:[%s241_s14] sm:$0xff]  ;;  %s246_s30 = scalar_lea.vmem %s2482_s1, %s1477_s23  ;;  %s2555_s5 = smov (!%p249_p0, %s1478_s5), 7 }
  0x1f   : > { %302 = vmatprep.subr.mxu0 %v256_v1  ;;  %v257_v3 = vld [vmem:[%s246_s30] sm:$0xff]  ;;  %427 = vmatprep.subr.mxu1 %v256_v1  ;;  %v258_v4 = vld [vmem:[%s246_s30 + $0x8] sm:$0xff]  ;;  %v259_v5 = vld [vmem:[%s246_s30 + $0x10] sm:$0xff]  ;;  %s1479_s6 = sshll.u32 %s2555_s5, 3  ;;  %s234_s14 = sand.u32 1, %s1882_s16  }
  0x20   : > { %303 = vmatpush1.msra.mxu0 %v255_v2  ;;  %428 = vmatpush1.msra.mxu1 %v255_v2  ;;  %v260_v6 = vld [vmem:[%s246_s30 + $0x18] sm:$0xff]  ;;  %v261_v7 = vld [vmem:[%s246_s30 + $0x20] sm:$0xff]  ;;  %v262_v8 = vld [vmem:[%s246_s30 + $0x28] sm:$0xff]  ;;  %s252_s11 = scalar_lea.vmem %s2483_s2, %s1479_s6  ;;  %s1527_s23 = sshll.u32 %s1894_s19, 4 }
  0x21   : > { %1480 = vmatmul.mubr.msk.f32.vlgmr.msra.gmra.mrb[0].mxu0 %vm277_vm0, %v257_v3  ;;  %v263_v9 = vld [vmem:[%s246_s30 + $0x30] sm:$0xff]  ;;  %v264_v10 = vld [vmem:[%s246_s30 + $0x38] sm:$0xff]  ;;  %v265_v11 = vld [vmem:[%s252_s11] sm:$0xff]  ;;  %s1473_s24 = sshll.u32 %s234_s14, 6  ;;  %s1365_s27 = sadd.s32 %s1527_s23, %s2011_s8 }
  0x22   : > { %372 = vmatprep.mubr.f32.mxu0 %v1908_v0  ;;  %1488 = vmatmul.mubr.msk.f32.vlgmr.msra.gmra.mrb[0].mxu1 %vm277_vm0, %v265_v11  ;;  %v266_v12 = vld [vmem:[%s252_s11 + $0x8] sm:$0xff]  ;;  %v267_v13 = vld [vmem:[%s252_s11 + $0x10] sm:$0xff]  ;;  %v268_v14 = vld [vmem:[%s252_s11 + $0x18] sm:$0xff]  ;;  %s1528_s30 = sshll.u32 %s1365_s27, 7  ;;  %s236_s5 = scalar_lea.vmem [#allocation2], %s1473_s24 }
  0x23   : > { %497 = vmatprep.mubr.f32.mxu1 %v1908_v0  ;;  %s1368_s6 = sshll.u32 %s236_s5, 4  ;;  %s2423_s11 = scalar_lea.hbm %s2485_s4, %s1528_s30  ;;  %s2425_s6 = int_to_ptr.vmem [resolvable:$true] %s1368_s6 }
  0x24   : > { %s2429_s19 = scalar_lea.sflag [#allocation3], %s234_s14  ;;  %s1812_s8 = scalar_lea.vmem %s2425_s6, 1024 }
  0x25   : > { %1481 = vmatmul.mubr.msk.f32.gmra.mrb[2].mxu0 %vm277_vm0, %v258_v4  ;;  %p1813_p1 = scmp.ne.s32.totalorder %s2425_s6, %s1812_s8  ;;  %s1910_s18 = smov [#allocation2]  }
  0x26   : > { %378 = vmatprep.mubr.f32.mxu0 %v1908_v0  ;;  %1489 = vmatmul.mubr.msk.f32.gmra.mrb[2].mxu1 %vm277_vm0, %v266_v12  ;;  %s1816_s12 = sshll.u32 %s1910_s18, 4  ;;  %s1817_s12 = int_to_ptr.vmem [resolvable:$false] %s1816_s12 }
  0x27   : > { %503 = vmatprep.mubr.f32.mxu1 %v1908_v0  ;;  %p1814_p2 = pnand %p1813_p1, %p1989_p3  ;;  %s1818_s13 = scalar_lea.vmem %s1817_s12, 2048 }
  0x28   : > { %p1819_p5 = scmp.lt.s32.totalorder %s2425_s6, %s1817_s12  ;;  %p1820_p6 = scmp.lt.s32.totalorder %s1818_s13, %s1812_s8 }
  0x29   : > { %1482 = vmatmul.mubr.msk.f32.gmra.mrb[4].mxu0 %vm277_vm0, %v259_v5  ;;  %p1815_p4 = pneg %p1814_p2 }
  0x2a   : > { %384 = vmatprep.mubr.f32.mxu0 %v1908_v0  ;;  %1490 = vmatmul.mubr.msk.f32.gmra.mrb[4].mxu1 %vm277_vm0, %v267_v13  ;;  %p1821_p7 = por %p1820_p6, %p1819_p5 }
  0x2b   : > { %509 = vmatprep.mubr.f32.mxu1 %v1908_v0 }
  0x2c   : > { %p1822_p9 = pnand %p1821_p7, %p1815_p4 }
  0x2d   : > { %1483 = vmatmul.mubr.msk.f32.gmra.mrb[6].mxu0 %vm277_vm0, %v260_v6 }
  0x2e   : > { %390 = vmatprep.mubr.f32.mxu0 %v1908_v0  ;;  %1491 = vmatmul.mubr.msk.f32.gmra.mrb[6].mxu1 %vm277_vm0, %v268_v14 }
  0x2f   : > { %749 = vmatprep.mubr.f32.mxu1 %v1908_v0 }
  0x31   : > { %1484 = vmatmul.mubr.msk.f32.gmra.mrb[8].mxu0 %vm277_vm0, %v261_v7 }
  0x32   : > { %396 = vmatprep.mubr.f32.mxu0 %v1908_v0 }
  0x35   : > { %1485 = vmatmul.mubr.msk.f32.gmra.mrb[10].mxu0 %vm277_vm0, %v262_v8 }
  0x36   : > { %402 = vmatprep.mubr.f32.mxu0 %v1908_v0 }
  0x39   : > { %1486 = vmatmul.mubr.msk.f32.gmra.mrb[12].mxu0 %vm277_vm0, %v263_v9 }
  0x3a   : > { %408 = vmatprep.mubr.f32.mxu0 %v1908_v0 }
  0x3d   : > { %1487 = vmatmul.mubr.msk.f32.gmra.mrb[14].mxu0 %vm277_vm0, %v264_v10 }
  0xf4   : > { %v368_v15 = vpop.f32.mrb[0].mxu0 }
  0xf5   : > { %524 = vxpose.xlu0.b32.start [1/4] (short) %v368_v15, 128  ;;  %v370_v16 = vpop.f32.mrb[1].mxu0  ;;  %v2075_v51 = vpop.f32.mrb[0].mxu1 }
  0xf6   : > { %556 = vxpose.xlu1.b32.start [1/4] (short) %v370_v16, 128  ;;  %2501 = vst [vmem:[#allocation5_spill] sm:$0xff] %v2075_v51  ;;  %v495_v52 = vpop.f32.mrb[1].mxu1 }
  0xf7   : > { %1294 = vmatprep.mubr.f32.mxu0 %v495_v52 }
  0xf8   : > { %v374_v17 = vpop.f32.mrb[2].mxu0 }
  0xf9   : > { %525 = vxpose.xlu0.b32.cont [2/4] (short) %v374_v17, 128  ;;  %v376_v18 = vpop.f32.mrb[3].mxu0  ;;  %v2077_v53 = vpop.f32.mrb[2].mxu1 }
  0xfa   : > { %557 = vxpose.xlu1.b32.cont [2/4] (short) %v376_v18, 128  ;;  %2502 = vst [vmem:[#allocation6_spill] sm:$0xff] %v2077_v53  ;;  %v2079_v55 = vpop.f32.mrb[3].mxu1 }
  0xfb   : > { %2503 = vst [vmem:[#allocation7_spill] sm:$0xff] %v2079_v55 }
  0xfc   : > { %v380_v19 = vpop.f32.mrb[4].mxu0 }
  0xfd   : > { %526 = vxpose.xlu0.b32.cont [3/4] (short) %v380_v19, 128  ;;  %v382_v20 = vpop.f32.mrb[5].mxu0  ;;  %v2082_v56 = vpop.f32.mrb[4].mxu1 }
  0xfe   : > { %558 = vxpose.xlu1.b32.cont [3/4] (short) %v382_v20, 128  ;;  %2504 = vst [vmem:[#allocation8_spill] sm:$0xff] %v2082_v56  ;;  %v2085_v57 = vpop.f32.mrb[5].mxu1 }
  0xff   : > { %2505 = vst [vmem:[#allocation9_spill] sm:$0xff] %v2085_v57 }
 0x100   : > { %v386_v21 = vpop.f32.mrb[6].mxu0 }
 0x101   : > { %527 = vxpose.xlu0.b32.end [4/4] (short) %v386_v21, 128  ;;  %v388_v22 = vpop.f32.mrb[7].mxu0  ;;  %v2087_v58 = vpop.f32.mrb[6].mxu1 }
 0x102   : > { %559 = vxpose.xlu1.b32.end [4/4] (short) %v388_v22, 128  ;;  %2506 = vst [vmem:[#allocation10_spill] sm:$0xff] %v2087_v58  ;;  %v2089_v60 = vpop.f32.mrb[7].mxu1 }
 0x103   : > { %2507 = vst [vmem:[#allocation11_spill] sm:$0xff] %v2089_v60 }
 0x104   : > { %v392_v24 = vpop.f32.mrb[8].mxu0 }
 0x105   : > { %v394_v26 = vpop.f32.mrb[9].mxu0  ;;  %v516_v28 = vadd.f32 %v392_v24, %v269_v23 }
 0x106   : > { %v517_v30 = vadd.f32 %v394_v26, %v270_v25 }
 0x108   : > { %v398_v31 = vpop.f32.mrb[10].mxu0 }
 0x109   : > { %v518_v32 = vadd.f32 %v398_v31, %v271_v27  ;;  %v400_v33 = vpop.f32.mrb[11].mxu0 }
 0x10a   : > { %v519_v34 = vadd.f32 %v400_v33, %v272_v29 }
 0x10b   : > { %v1535_v35 = vpack.c.bf16 %v518_v32, %v516_v28 }
 0x10c   : > { %v1533_v36 = vpack.c.bf16 %v519_v34, %v517_v30  ;;  %v404_v38 = vpop.f32.mrb[12].mxu0 }
 0x10d   : > { %v406_v40 = vpop.f32.mrb[13].mxu0  ;;  %v520_v42 = vadd.f32 %v404_v38, %v273_v37 }
 0x10e   : > { %1534 = vmatprep.subr.bf16.mxu1 %v1533_v36  ;;  %v521_v44 = vadd.f32 %v406_v40, %v274_v39 }
 0x10f   : > { %1536 = vmatpush1.bf16.msra.mxu1 %v1535_v35 }
 0x110   : > { %v410_v45 = vpop.f32.mrb[14].mxu0 }
 0x111   : > { %v522_v46 = vadd.f32 %v410_v45, %v275_v41  ;;  %v412_v47 = vpop.f32.mrb[15].mxu0 }
 0x112   : > { %v523_v48 = vadd.f32 %v412_v47, %v276_v43 }
 0x113   : > { %v1539_v49 = vpack.c.bf16 %v522_v46, %v520_v42 }
 0x114   : > { %v1537_v50 = vpack.c.bf16 %v523_v48, %v521_v44 }
 0x116   : > { %1538 = vmatprep.subr.bf16.mxu1 %v1537_v50 }
 0x117   : > { %1540 = vmatpush1.bf16.msra.mxu1 %v1539_v49 }
 0x175   : > { %v540_v54 = vpop.trf.xlu0 }
 0x176   : > { %1492 = vmatmul.mubr.msk.f32.vlgmr.msra.gmra.mrb[8].mxu1 %vm588_vm1, %v540_v54  ;;  %v572_v5 = vpop.trf.xlu1 }
 0x177   : > { %755 = vmatprep.mubr.f32.mxu1 %v1908_v0 }
 0x179   : > { %v541_v59 = vpop.trf.xlu0 }
 0x17a   : > { %1493 = vmatmul.mubr.msk.f32.gmra.mrb[10].mxu1 %vm588_vm1, %v541_v59  ;;  %v573_v7 = vpop.trf.xlu1 }
 0x17b   : > { %761 = vmatprep.mubr.f32.mxu1 %v1908_v0 }
 0x17d   : > { %v542_v61 = vpop.trf.xlu0 }
 0x17e   : > { %1494 = vmatmul.mubr.msk.f32.gmra.mrb[12].mxu1 %vm588_vm1, %v542_v61  ;;  %v574_v10 = vpop.trf.xlu1 }
 0x17f   : > { %767 = vmatprep.mubr.f32.mxu1 %v1908_v0 }
 0x181   : > { %v543_v62 = vpop.trf.xlu0 }
 0x182   : > { %1495 = vmatmul.mubr.msk.f32.gmra.mrb[14].mxu1 %vm588_vm1, %v543_v62  ;;  %v575_v12 = vpop.trf.xlu1 }
 0x183   : > { %773 = vmatprep.mubr.f32.mxu1 %v1908_v0 }
 0x185   : > { %v544_v63 = vpop.trf.xlu0 }
 0x186   : > { %1496 = vmatmul.mubr.msk.f32.gmra.mrb[16].mxu1 %vm588_vm1, %v544_v63  ;;  %v576_v15 = vpop.trf.xlu1 }
 0x187   : > { %779 = vmatprep.mubr.f32.mxu1 %v1908_v0 }
 0x189   : > { %v545_v1 = vpop.trf.xlu0 }
 0x18a   : > { %1497 = vmatmul.mubr.msk.f32.gmra.mrb[18].mxu1 %vm588_vm1, %v545_v1  ;;  %v577_v17 = vpop.trf.xlu1 }
 0x18b   : > { %785 = vmatprep.mubr.f32.mxu1 %v1908_v0 }
 0x18d   : > { %v546_v2 = vpop.trf.xlu0 }
 0x18e   : > { %1498 = vmatmul.mubr.msk.f32.gmra.mrb[20].mxu1 %vm588_vm1, %v546_v2  ;;  %v578_v18 = vpop.trf.xlu1 }
 0x18f   : > { %791 = vmatprep.mubr.f32.mxu1 %v1908_v0 }
 0x191   : > { %v547_v3 = vpop.trf.xlu0 }
 0x192   : > { %1499 = vmatmul.mubr.msk.f32.gmra.mrb[22].mxu1 %vm588_vm1, %v547_v3  ;;  %v579_v19 = vpop.trf.xlu1 }
 0x193   : > { %797 = vmatprep.mubr.f32.mxu1 %v1908_v0 }
 0x195   : > { %v548_v4 = vpop.trf.xlu0 }
 0x196   : > { %1500 = vmatmul.mubr.msk.f32.gmra.mrb[24].mxu1 %vm588_vm1, %v548_v4  ;;  %v580_v20 = vpop.trf.xlu1 }
 0x197   : > { %803 = vmatprep.mubr.f32.mxu1 %v1908_v0 }
 0x199   : > { %v549_v6 = vpop.trf.xlu0 }
 0x19a   : > { %1501 = vmatmul.mubr.msk.f32.gmra.mrb[26].mxu1 %vm588_vm1, %v549_v6  ;;  %v581_v21 = vpop.trf.xlu1 }
 0x19b   : > { %809 = vmatprep.mubr.f32.mxu1 %v1908_v0 }
 0x19d   : > { %v550_v8 = vpop.trf.xlu0 }
 0x19e   : > { %1502 = vmatmul.mubr.msk.f32.gmra.mrb[28].mxu1 %vm588_vm1, %v550_v8  ;;  %v582_v22 = vpop.trf.xlu1 }
 0x19f   : > { %815 = vmatprep.mubr.f32.mxu1 %v1908_v0 }
 0x1a1   : > { %v551_v9 = vpop.trf.xlu0 }
 0x1a2   : > { %1503 = vmatmul.mubr.msk.f32.gmra.mrb[30].mxu1 %vm588_vm1, %v551_v9  ;;  %v583_v23 = vpop.trf.xlu1 }
 0x1a3   : > { %821 = vmatprep.mubr.f32.mxu1 %v1908_v0 }
 0x1a5   : > { %v552_v11 = vpop.trf.xlu0 }
 0x1a6   : > { %1504 = vmatmul.mubr.msk.f32.gmra.mrb[32].mxu1 %vm588_vm1, %v552_v11  ;;  %v584_v24 = vpop.trf.xlu1 }
 0x1a7   : > { %827 = vmatprep.mubr.f32.mxu1 %v1908_v0 }
 0x1a9   : > { %v553_v13 = vpop.trf.xlu0 }
 0x1aa   : > { %1505 = vmatmul.mubr.msk.f32.gmra.mrb[34].mxu1 %vm588_vm1, %v553_v13  ;;  %v585_v25 = vpop.trf.xlu1 }
 0x1ab   : > { %833 = vmatprep.mubr.f32.mxu1 %v1908_v0 }
 0x1ad   : > { %v554_v14 = vpop.trf.xlu0 }
 0x1ae   : > { %1506 = vmatmul.mubr.msk.f32.gmra.mrb[36].mxu1 %vm588_vm1, %v554_v14  ;;  %v586_v26 = vpop.trf.xlu1 }
 0x1af   : > { %839 = vmatprep.mubr.f32.mxu1 %v1908_v0 }
 0x1b1   : > { %v555_v16 = vpop.trf.xlu0 }
 0x1b2   : > { %1507 = vmatmul.mubr.msk.f32.gmra.mrb[38].mxu1 %vm588_vm1, %v555_v16  ;;  %v587_v27 = vpop.trf.xlu1 }
 0x1b3   : > { %845 = vmatprep.mubr.f32.mxu1 %v1908_v0 }
 0x1b6   : > { %1508 = vmatmul.mubr.msk.f32.gmra.mrb[40].mxu1 %vm588_vm1, %v572_v5 }
 0x1b7   : > { %851 = vmatprep.mubr.f32.mxu1 %v1908_v0 }
 0x1ba   : > { %1509 = vmatmul.mubr.msk.f32.gmra.mrb[42].mxu1 %vm588_vm1, %v573_v7 }
 0x1bb   : > { %857 = vmatprep.mubr.f32.mxu1 %v1908_v0 }
 0x1be   : > { %1510 = vmatmul.mubr.msk.f32.gmra.mrb[44].mxu1 %vm588_vm1, %v574_v10 }
 0x1bf   : > { %863 = vmatprep.mubr.f32.mxu1 %v1908_v0 }
 0x1c2   : > { %1511 = vmatmul.mubr.msk.f32.gmra.mrb[46].mxu1 %vm588_vm1, %v575_v12 }
 0x1c3   : > { %869 = vmatprep.mubr.f32.mxu1 %v1908_v0 }
 0x1c6   : > { %1512 = vmatmul.mubr.msk.f32.gmra.mrb[48].mxu1 %vm588_vm1, %v576_v15 }
 0x1c7   : > { %875 = vmatprep.mubr.f32.mxu1 %v1908_v0 }
 0x1ca   : > { %1513 = vmatmul.mubr.msk.f32.gmra.mrb[50].mxu1 %vm588_vm1, %v577_v17 }
 0x1cb   : > { %881 = vmatprep.mubr.f32.mxu1 %v1908_v0 }
 0x1ce   : > { %1514 = vmatmul.mubr.msk.f32.gmra.mrb[52].mxu1 %vm588_vm1, %v578_v18 }
 0x1cf   : > { %887 = vmatprep.mubr.f32.mxu1 %v1908_v0 }
 0x1d2   : > { %1515 = vmatmul.mubr.msk.f32.gmra.mrb[54].mxu1 %vm588_vm1, %v579_v19 }
 0x1d3   : > { %893 = vmatprep.mubr.f32.mxu1 %v1908_v0 }
 0x1d6   : > { %1516 = vmatmul.mubr.msk.f32.gmra.mrb[56].mxu1 %vm588_vm1, %v580_v20 }
 0x1d7   : > { %899 = vmatprep.mubr.f32.mxu1 %v1908_v0 }
 0x1da   : > { %1517 = vmatmul.mubr.msk.f32.gmra.mrb[58].mxu1 %vm588_vm1, %v581_v21 }
 0x1db   : > { %905 = vmatprep.mubr.f32.mxu1 %v1908_v0 }
 0x1de   : > { %1518 = vmatmul.mubr.msk.f32.gmra.mrb[60].mxu1 %vm588_vm1, %v582_v22 }
 0x1df   : > { %911 = vmatprep.mubr.f32.mxu1 %v1908_v0 }
 0x1e2   : > { %1519 = vmatmul.mubr.msk.f32.gmra.mrb[62].mxu1 %vm588_vm1, %v583_v23 }
 0x1e3   : > { %917 = vmatprep.mubr.f32.mxu1 %v1908_v0 }
 0x1e6   : > { %1520 = vmatmul.mubr.msk.f32.gmra.mrb[64].mxu1 %vm588_vm1, %v584_v24 }
 0x1e7   : > { %923 = vmatprep.mubr.f32.mxu1 %v1908_v0 }
 0x1ea   : > { %1521 = vmatmul.mubr.msk.f32.gmra.mrb[66].mxu1 %vm588_vm1, %v585_v25 }
 0x1eb   : > { %929 = vmatprep.mubr.f32.mxu1 %v1908_v0 }
 0x1ee   : > { %1522 = vmatmul.mubr.msk.f32.gmra.mrb[68].mxu1 %vm588_vm1, %v586_v26 }
 0x1ef   : > { %935 = vmatprep.mubr.f32.mxu1 %v1908_v0 }
 0x1f2   : > { %1523 = vmatmul.mubr.msk.f32.gmra.mrb[70].mxu1 %vm588_vm1, %v587_v27 }
 0x249   : > { %v2152_v28 = vpop.f32.mrb[8].mxu1 }
 0x24a   : > { %v2154_v29 = vpop.f32.mrb[9].mxu1 }
 0x24b   : > { %v942_v30 = vmax.f32 %v2152_v28, %v2154_v29 }
 0x24d   : > { %943 = vmax.xlane.f32.xlu0 %v942_v30  ;;  %v2158_v31 = vpop.f32.mrb[10].mxu1 }
 0x24e   : > { %v2160_v32 = vpop.f32.mrb[11].mxu1 }
 0x24f   : > { %v945_v33 = vmax.f32 %v2158_v31, %v2160_v32 }
 0x251   : > { %946 = vmax.xlane.f32.xlu1 %v945_v33  ;;  %v2164_v34 = vpop.f32.mrb[12].mxu1 }
 0x252   : > { %v2166_v0 = vpop.f32.mrb[13].mxu1 }
 0x253   : > { %v948_v35 = vmax.f32 %v2164_v34, %v2166_v0 }
 0x255   : > { %949 = vmax.xlane.f32.xlu1 %v948_v35  ;;  %v2170_v36 = vpop.f32.mrb[14].mxu1 }
 0x256   : > { %v2172_v37 = vpop.f32.mrb[15].mxu1 }
 0x257   : > { %v951_v38 = vmax.f32 %v2170_v36, %v2172_v37 }
 0x259   : > { %952 = vmax.xlane.f32.xlu1 %v951_v38  ;;  %v2176_v39 = vpop.f32.mrb[16].mxu1 }
 0x25a   : > { %v2178_v40 = vpop.f32.mrb[17].mxu1 }
 0x25b   : > { %v954_v41 = vmax.f32 %v2176_v39, %v2178_v40 }
 0x25d   : > { %955 = vmax.xlane.f32.xlu0 %v954_v41  ;;  %v2182_v42 = vpop.f32.mrb[18].mxu1 }
 0x25e   : > { %v2184_v43 = vpop.f32.mrb[19].mxu1 }
 0x25f   : > { %v957_v44 = vmax.f32 %v2182_v42, %v2184_v43 }
 0x261   : > { %958 = vmax.xlane.f32.xlu1 %v957_v44  ;;  %v2188_v45 = vpop.f32.mrb[20].mxu1 }
 0x262   : > { %v2190_v46 = vpop.f32.mrb[21].mxu1 }
 0x263   : > { %v960_v47 = vmax.f32 %v2188_v45, %v2190_v46 }
 0x265   : > { %961 = vmax.xlane.f32.xlu0 %v960_v47  ;;  %v2194_v48 = vpop.f32.mrb[22].mxu1 }
 0x266   : > { %v2196_v49 = vpop.f32.mrb[23].mxu1 }
 0x267   : > { %v963_v50 = vmax.f32 %v2194_v48, %v2196_v49 }
 0x269   : > { %964 = vmax.xlane.f32.xlu1 %v963_v50  ;;  %v2200_v52 = vpop.f32.mrb[24].mxu1 }
 0x26a   : > { %v2202_v54 = vpop.f32.mrb[25].mxu1 }
 0x26b   : > { %v966_v59 = vmax.f32 %v2200_v52, %v2202_v54 }
 0x26d   : > { %967 = vmax.xlane.f32.xlu0 %v966_v59  ;;  %v2206_v61 = vpop.f32.mrb[26].mxu1 }
 0x26e   : > { %v2208_v62 = vpop.f32.mrb[27].mxu1 }
 0x26f   : > { %v969_v63 = vmax.f32 %v2206_v61, %v2208_v62 }
 0x271   : > { %970 = vmax.xlane.f32.xlu1 %v969_v63  ;;  %v2212_v1 = vpop.f32.mrb[28].mxu1 }
 0x272   : > { %v2214_v2 = vpop.f32.mrb[29].mxu1 }
 0x273   : > { %v972_v3 = vmax.f32 %v2212_v1, %v2214_v2 }
 0x275   : > { %973 = vmax.xlane.f32.xlu0 %v972_v3  ;;  %v2218_v4 = vpop.f32.mrb[30].mxu1 }
 0x276   : > { %v2220_v5 = vpop.f32.mrb[31].mxu1 }
 0x277   : > { %v975_v6 = vmax.f32 %v2218_v4, %v2220_v5 }
 0x279   : > { %976 = vmax.xlane.f32.xlu1 %v975_v6  ;;  %v2224_v7 = vpop.f32.mrb[32].mxu1 }
 0x27a   : > { %v2226_v8 = vpop.f32.mrb[33].mxu1 }
 0x27b   : > { %v978_v9 = vmax.f32 %v2224_v7, %v2226_v8 }
 0x27d   : > { %979 = vmax.xlane.f32.xlu0 %v978_v9  ;;  %v2230_v10 = vpop.f32.mrb[34].mxu1 }
 0x27e   : > { %v2232_v11 = vpop.f32.mrb[35].mxu1 }
 0x27f   : > { %v981_v12 = vmax.f32 %v2230_v10, %v2232_v11 }
 0x281   : > { %982 = vmax.xlane.f32.xlu1 %v981_v12  ;;  %v2236_v13 = vpop.f32.mrb[36].mxu1 }
 0x282   : > { %v2238_v14 = vpop.f32.mrb[37].mxu1 }
 0x283   : > { %v984_v15 = vmax.f32 %v2236_v13, %v2238_v14 }
 0x285   : > { %985 = vmax.xlane.f32.xlu0 %v984_v15  ;;  %v2242_v16 = vpop.f32.mrb[38].mxu1 }
 0x286   : > { %v2244_v17 = vpop.f32.mrb[39].mxu1 }
 0x287   : > { %v987_v18 = vmax.f32 %v2242_v16, %v2244_v17 }
 0x289   : > { %988 = vmax.xlane.f32.xlu1 %v987_v18  ;;  %v2248_v19 = vpop.f32.mrb[40].mxu1 }
 0x28a   : > { %v2250_v20 = vpop.f32.mrb[41].mxu1 }
 0x28b   : > { %v990_v21 = vmax.f32 %v2248_v19, %v2250_v20 }
 0x28d   : > { %991 = vmax.xlane.f32.xlu0 %v990_v21  ;;  %v2254_v22 = vpop.f32.mrb[42].mxu1 }
 0x28e   : > { %v2256_v23 = vpop.f32.mrb[43].mxu1 }
 0x28f   : > { %v993_v24 = vmax.f32 %v2254_v22, %v2256_v23 }
 0x291   : > { %994 = vmax.xlane.f32.xlu1 %v993_v24  ;;  %v2260_v25 = vpop.f32.mrb[44].mxu1 }
 0x292   : > { %v2262_v26 = vpop.f32.mrb[45].mxu1 }
 0x293   : > { %v996_v27 = vmax.f32 %v2260_v25, %v2262_v26 }
 0x295   : > { %997 = vmax.xlane.f32.xlu0 %v996_v27  ;;  %v2266_v30 = vpop.f32.mrb[46].mxu1 }
 0x296   : > { %v2268_v33 = vpop.f32.mrb[47].mxu1 }
 0x297   : > { %v999_v35 = vmax.f32 %v2266_v30, %v2268_v33 }
 0x299   : > { %1000 = vmax.xlane.f32.xlu1 %v999_v35  ;;  %v2272_v38 = vpop.f32.mrb[48].mxu1 }
 0x29a   : > { %v2274_v41 = vpop.f32.mrb[49].mxu1 }
 0x29b   : > { %v1002_v44 = vmax.f32 %v2272_v38, %v2274_v41 }
 0x29d   : > { %1003 = vmax.xlane.f32.xlu0 %v1002_v44  ;;  %v2278_v47 = vpop.f32.mrb[50].mxu1 }
 0x29e   : > { %v2280_v50 = vpop.f32.mrb[51].mxu1 }
 0x29f   : > { %v1005_v59 = vmax.f32 %v2278_v47, %v2280_v50 }
 0x2a1   : > { %1006 = vmax.xlane.f32.xlu1 %v1005_v59  ;;  %v2284_v63 = vpop.f32.mrb[52].mxu1 }
 0x2a2   : > { %v2286_v3 = vpop.f32.mrb[53].mxu1 }
 0x2a3   : > { %v1008_v6 = vmax.f32 %v2284_v63, %v2286_v3 }
 0x2a5   : > { %1009 = vmax.xlane.f32.xlu0 %v1008_v6  ;;  %v2290_v9 = vpop.f32.mrb[54].mxu1 }
 0x2a6   : > { %v2292_v12 = vpop.f32.mrb[55].mxu1 }
 0x2a7   : > { %v1011_v15 = vmax.f32 %v2290_v9, %v2292_v12 }
 0x2a9   : > { %1012 = vmax.xlane.f32.xlu1 %v1011_v15  ;;  %v2296_v18 = vpop.f32.mrb[56].mxu1 }
 0x2aa   : > { %v2298_v21 = vpop.f32.mrb[57].mxu1 }
 0x2ab   : > { %v1014_v24 = vmax.f32 %v2296_v18, %v2298_v21 }
 0x2ad   : > { %1015 = vmax.xlane.f32.xlu0 %v1014_v24  ;;  %v2302_v27 = vpop.f32.mrb[58].mxu1 }
 0x2ae   : > { %2508 = vst [vmem:[#allocation12_spill] sm:$0xff] %v2302_v27  ;;  %v2304_v35 = vpop.f32.mrb[59].mxu1 }
 0x2af   : > { %2509 = vst [vmem:[#allocation13_spill] sm:$0xff] %v2304_v35  ;;  %v1017_v44 = vmax.f32 %v2302_v27, %v2304_v35 }
 0x2b1   : > { %1018 = vmax.xlane.f32.xlu1 %v1017_v44  ;;  %v2308_v59 = vpop.f32.mrb[60].mxu1 }
 0x2b2   : > { %2510 = vst [vmem:[#allocation14_spill] sm:$0xff] %v2308_v59  ;;  %v2310_v6 = vpop.f32.mrb[61].mxu1 }
 0x2b3   : > { %2511 = vst [vmem:[#allocation15_spill] sm:$0xff] %v2310_v6  ;;  %v1020_v15 = vmax.f32 %v2308_v59, %v2310_v6 }
 0x2b5   : > { %1021 = vmax.xlane.f32.xlu0 %v1020_v15  ;;  %v2314_v58 = vpop.f32.mrb[62].mxu1 }
 0x2b6   : > { %2512 = vst [vmem:[#allocation16_spill] sm:$0xff] %v2314_v58  ;;  %v2316_v60 = vpop.f32.mrb[63].mxu1 }
 0x2b7   : > { %2513 = vst [vmem:[#allocation17_spill] sm:$0xff] %v2316_v60  ;;  %v1023_v24 = vmax.f32 %v2314_v58, %v2316_v60 }
 0x2b9   : > { %1024 = vmax.xlane.f32.xlu1 %v1023_v24  ;;  %v2320_v56 = vpop.f32.mrb[64].mxu1 }
 0x2ba   : > { %2514 = vst [vmem:[#allocation18_spill] sm:$0xff] %v2320_v56  ;;  %v2322_v57 = vpop.f32.mrb[65].mxu1 }
 0x2bb   : > { %2515 = vst [vmem:[#allocation19_spill] sm:$0xff] %v2322_v57  ;;  %v1026_v44 = vmax.f32 %v2320_v56, %v2322_v57 }
 0x2bd   : > { %1027 = vmax.xlane.f32.xlu0 %v1026_v44  ;;  %v2326_v53 = vpop.f32.mrb[66].mxu1 }
 0x2be   : > { %2516 = vst [vmem:[#allocation20_spill] sm:$0xff] %v2326_v53  ;;  %v2328_v55 = vpop.f32.mrb[67].mxu1 }
 0x2bf   : > { %2517 = vst [vmem:[#allocation21_spill] sm:$0xff] %v2328_v55  ;;  %v1029_v15 = vmax.f32 %v2326_v53, %v2328_v55 }
 0x2c1   : > { %1030 = vmax.xlane.f32.xlu1 %v1029_v15  ;;  %v2332_v51 = vpop.f32.mrb[68].mxu1 }
 0x2c2   : > { %2518 = vst [vmem:[#allocation22_spill] sm:$0xff] %v2332_v51  ;;  %v2334_v60 = vpop.f32.mrb[69].mxu1 }
 0x2c3   : > { %2519 = vst [vmem:[#allocation23_spill] sm:$0xff] %v2334_v60  ;;  %v1032_v24 = vmax.f32 %v2332_v51, %v2334_v60 }
 0x2c5   : > { %1033 = vmax.xlane.f32.xlu0 %v1032_v24  ;;  %v2338_v58 = vpop.f32.mrb[70].mxu1 }
 0x2c6   : > { %v2340_v57 = vpop.f32.mrb[71].mxu1 }
 0x2c7   : > { %2520 = vst [vmem:[#allocation24_spill] sm:$0xff] %v2340_v57  ;;  %v1035_v44 = vmax.f32 %v2338_v58, %v2340_v57 }
 0x2c9   : > { %1036 = vmax.xlane.f32.xlu1 %v1035_v44 }
 0x2da   : > { %v944_v56 = vpop.xlane.xlu0 %943 }
 0x2db   : > { %v1038_v55 = vsub.f32 %v2152_v28, %v944_v56  ;;  %v1039_v15 = vsub.f32 %v2154_v29, %v944_v56 }
 0x2dd   : > { %v1102_v53 = vmul.f32 1.442695, %v1038_v55  ;;  %v1104_v6 = vmul.f32 1.442695, %v1039_v15 }
 0x2de   : > { %v947_v59 = vpop.xlane.xlu1 %946 }
 0x2df   : > { %v1040_v35 = vsub.f32 %v2158_v31, %v947_v59  ;;  %v1041_v24 = vsub.f32 %v2160_v32, %v947_v59  ;;  %1680 = vpow2.f32 %v1102_v53 }
 0x2e0   : > { %1682 = vpow2.f32 %v1104_v6 }
 0x2e1   : > { %v1106_v60 = vmul.f32 1.442695, %v1040_v35  ;;  %v1108_v51 = vmul.f32 1.442695, %v1041_v24 }
 0x2e2   : > { %v950_v27 = vpop.xlane.xlu1 %949 }
 0x2e3   : > { %1684 = vpow2.f32 %v1106_v60  ;;  %v1042_v44 = vsub.f32 %v2164_v34, %v950_v27  ;;  %v1043_v57 = vsub.f32 %v2166_v0, %v950_v27 }
 0x2e4   : > { %1686 = vpow2.f32 %v1108_v51 }
 0x2e5   : > { %v1110_v28 = vmul.f32 1.442695, %v1042_v44  ;;  %v1112_v56 = vmul.f32 1.442695, %v1043_v57 }
 0x2e6   : > { %v953_v55 = vpop.xlane.xlu1 %952 }
 0x2e7   : > { %v1044_v29 = vsub.f32 %v2170_v36, %v953_v55  ;;  %v1045_v31 = vsub.f32 %v2172_v37, %v953_v55  ;;  %1688 = vpow2.f32 %v1110_v28 }
 0x2e8   : > { %1690 = vpow2.f32 %v1112_v56 }
 0x2e9   : > { %v1114_v32 = vmul.f32 1.442695, %v1044_v29  ;;  %v1116_v53 = vmul.f32 1.442695, %v1045_v31  ;;  %v1681_v59 = vpop.eup %1680 }
 0x2ea   : > { %v956_v35 = vpop.xlane.xlu0 %955  ;;  %v1683_v0 = vpop.eup %1682 }
 0x2eb   : > { %1692 = vpow2.f32 %v1114_v32  ;;  %v1046_v60 = vsub.f32 %v2176_v39, %v956_v35  ;;  %v1047_v34 = vsub.f32 %v2178_v40, %v956_v35 }
 0x2ec   : > { %1694 = vpow2.f32 %v1116_v53 }
 0x2ed   : > { %v1685_v51 = vpop.eup %1684  ;;  %v1118_v57 = vmul.f32 1.442695, %v1046_v60  ;;  %v1120_v6 = vmul.f32 1.442695, %v1047_v34 }
 0x2ee   : > { %v1687_v27 = vpop.eup %1686  ;;  %v959_v36 = vpop.xlane.xlu1 %958  ;;  %v1543_v15 = vpack.c.bf16 %v1685_v51, %v1681_v59 }
 0x2ef   : > { %v1048_v37 = vsub.f32 %v2182_v42, %v959_v36  ;;  %v1049_v24 = vsub.f32 %v2184_v43, %v959_v36  ;;  %v1541_v44 = vpack.c.bf16 %v1687_v27, %v1683_v0  ;;  %1696 = vpow2.f32 %v1118_v57 }
 0x2f0   : > { %1698 = vpow2.f32 %v1120_v6 }
 0x2f1   : > { %v1122_v28 = vmul.f32 1.442695, %v1048_v37  ;;  %v1124_v56 = vmul.f32 1.442695, %v1049_v24  ;;  %1542 = vmatprep.subr.bf16.mxu0 %v1541_v44  ;;  %v1689_v40 = vpop.eup %1688 }
 0x2f2   : > { %1544 = vmatpush1.bf16.xpose.msra.mxu0 %v1543_v15  ;;  %v962_v39 = vpop.xlane.xlu0 %961  ;;  %v1691_v31 = vpop.eup %1690 }
 0x2f3   : > { %1700 = vpow2.f32 %v1122_v28  ;;  %v1050_v55 = vsub.f32 %v2188_v45, %v962_v39  ;;  %v1051_v29 = vsub.f32 %v2190_v46, %v962_v39 }
 0x2f4   : > { %1702 = vpow2.f32 %v1124_v56 }
 0x2f5   : > { %v1693_v32 = vpop.eup %1692  ;;  %v1126_v42 = vmul.f32 1.442695, %v1050_v55  ;;  %v1128_v43 = vmul.f32 1.442695, %v1051_v29 }
 0x2f6   : > { %v1695_v53 = vpop.eup %1694  ;;  %v965_v35 = vpop.xlane.xlu1 %964  ;;  %v1547_v59 = vpack.c.bf16 %v1693_v32, %v1689_v40 }
 0x2f7   : > { %v1052_v60 = vsub.f32 %v2194_v48, %v965_v35  ;;  %v1053_v34 = vsub.f32 %v2196_v49, %v965_v35  ;;  %v1545_v0 = vpack.c.bf16 %v1695_v53, %v1691_v31  ;;  %1704 = vpow2.f32 %v1126_v42 }
 0x2f8   : > { %1706 = vpow2.f32 %v1128_v43 }
 0x2f9   : > { %v1130_v51 = vmul.f32 1.442695, %v1052_v60  ;;  %v1132_v57 = vmul.f32 1.442695, %v1053_v34  ;;  %1546 = vmatprep.subr.bf16.mxu0 %v1545_v0  ;;  %v1697_v46 = vpop.eup %1696 }
 0x2fa   : > { %1548 = vmatpush1.bf16.xpose.msra.mxu0 %v1547_v59  ;;  %v968_v45 = vpop.xlane.xlu0 %967  ;;  %v1699_v36 = vpop.eup %1698 }
 0x2fb   : > { %1708 = vpow2.f32 %v1130_v51  ;;  %v1054_v27 = vsub.f32 %v2200_v52, %v968_v45  ;;  %v1055_v6 = vsub.f32 %v2202_v54, %v968_v45 }
 0x2fc   : > { %1710 = vpow2.f32 %v1132_v57 }
 0x2fd   : > { %v1701_v15 = vpop.eup %1700  ;;  %v1134_v48 = vmul.f32 1.442695, %v1054_v27  ;;  %v1136_v49 = vmul.f32 1.442695, %v1055_v6 }
 0x2fe   : > { %v1703_v37 = vpop.eup %1702  ;;  %v971_v24 = vpop.xlane.xlu1 %970  ;;  %v1551_v44 = vpack.c.bf16 %v1701_v15, %v1697_v46 }
 0x2ff   : > { %v1056_v28 = vsub.f32 %v2206_v61, %v971_v24  ;;  %v1057_v56 = vsub.f32 %v2208_v62, %v971_v24  ;;  %v1549_v39 = vpack.c.bf16 %v1703_v37, %v1699_v36  ;;  %1712 = vpow2.f32 %v1134_v48 }
 0x300   : > { %1714 = vpow2.f32 %v1136_v49 }
 0x301   : > { %v1138_v40 = vmul.f32 1.442695, %v1056_v28  ;;  %v1140_v55 = vmul.f32 1.442695, %v1057_v56  ;;  %1550 = vmatprep.subr.bf16.mxu0 %v1549_v39  ;;  %v1705_v54 = vpop.eup %1704 }
 0x302   : > { %1552 = vmatpush1.bf16.xpose.msra.mxu0 %v1551_v44  ;;  %v974_v52 = vpop.xlane.xlu0 %973  ;;  %v1707_v32 = vpop.eup %1706 }
 0x303   : > { %1716 = vpow2.f32 %v1138_v40  ;;  %v1058_v29 = vsub.f32 %v2212_v1, %v974_v52  ;;  %v1059_v31 = vsub.f32 %v2214_v2, %v974_v52 }
 0x304   : > { %1718 = vpow2.f32 %v1140_v55 }
 0x305   : > { %v1709_v42 = vpop.eup %1708  ;;  %v1142_v61 = vmul.f32 1.442695, %v1058_v29  ;;  %v1144_v62 = vmul.f32 1.442695, %v1059_v31 }
 0x306   : > { %v1711_v53 = vpop.eup %1710  ;;  %v977_v43 = vpop.xlane.xlu1 %976  ;;  %v1555_v35 = vpack.c.bf16 %v1709_v42, %v1705_v54 }
 0x307   : > { %v1060_v59 = vsub.f32 %v2218_v4, %v977_v43  ;;  %v1061_v60 = vsub.f32 %v2220_v5, %v977_v43  ;;  %v1553_v34 = vpack.c.bf16 %v1711_v53, %v1707_v32  ;;  %1720 = vpow2.f32 %v1142_v61 }
 0x308   : > { %1722 = vpow2.f32 %v1144_v62 }
 0x309   : > { %v1146_v0 = vmul.f32 1.442695, %v1060_v59  ;;  %v1148_v51 = vmul.f32 1.442695, %v1061_v60  ;;  %1554 = vmatprep.subr.bf16.mxu0 %v1553_v34  ;;  %v1713_v2 = vpop.eup %1712 }
 0x30a   : > { %1556 = vmatpush1.bf16.xpose.msra.mxu0 %v1555_v35  ;;  %v980_v1 = vpop.xlane.xlu0 %979  ;;  %v1715_v46 = vpop.eup %1714 }
 0x30b   : > { %1724 = vpow2.f32 %v1146_v0  ;;  %v1062_v57 = vsub.f32 %v2224_v7, %v980_v1  ;;  %v1063_v45 = vsub.f32 %v2226_v8, %v980_v1 }
 0x30c   : > { %1726 = vpow2.f32 %v1148_v51 }
 0x30d   : > { %v1717_v27 = vpop.eup %1716  ;;  %v1150_v4 = vmul.f32 1.442695, %v1062_v57  ;;  %v1152_v5 = vmul.f32 1.442695, %v1063_v45 }
 0x30e   : > { %v1719_v6 = vpop.eup %1718  ;;  %v983_v36 = vpop.xlane.xlu1 %982  ;;  %v1559_v15 = vpack.c.bf16 %v1717_v27, %v1713_v2 }
 0x30f   : > { %v1064_v48 = vsub.f32 %v2230_v10, %v983_v36  ;;  %v1065_v37 = vsub.f32 %v2232_v11, %v983_v36  ;;  %v1557_v49 = vpack.c.bf16 %v1719_v6, %v1715_v46  ;;  %1728 = vpow2.f32 %v1150_v4 }
 0x310   : > { %1730 = vpow2.f32 %v1152_v5 }
 0x311   : > { %v1154_v24 = vmul.f32 1.442695, %v1064_v48  ;;  %v1156_v44 = vmul.f32 1.442695, %v1065_v37  ;;  %1558 = vmatprep.subr.bf16.mxu0 %v1557_v49  ;;  %v1721_v8 = vpop.eup %1720 }
 0x312   : > { %1560 = vmatpush1.bf16.xpose.msra.mxu0 %v1559_v15  ;;  %v986_v7 = vpop.xlane.xlu0 %985  ;;  %v1723_v39 = vpop.eup %1722 }
 0x313   : > { %1732 = vpow2.f32 %v1154_v24  ;;  %v1066_v28 = vsub.f32 %v2236_v13, %v986_v7  ;;  %v1067_v56 = vsub.f32 %v2238_v14, %v986_v7 }
 0x314   : > { %1734 = vpow2.f32 %v1156_v44 }
 0x315   : > { %v1725_v40 = vpop.eup %1724  ;;  %v1158_v10 = vmul.f32 1.442695, %v1066_v28  ;;  %v1160_v11 = vmul.f32 1.442695, %v1067_v56 }
 0x316   : > { %v1727_v55 = vpop.eup %1726  ;;  %v989_v52 = vpop.xlane.xlu1 %988  ;;  %v1563_v54 = vpack.c.bf16 %v1725_v40, %v1721_v8 }
 0x317   : > { %v1068_v29 = vsub.f32 %v2242_v16, %v989_v52  ;;  %v1069_v31 = vsub.f32 %v2244_v17, %v989_v52  ;;  %v1561_v32 = vpack.c.bf16 %v1727_v55, %v1723_v39  ;;  %1736 = vpow2.f32 %v1158_v10 }
 0x318   : > { %1738 = vpow2.f32 %v1160_v11 }
 0x319   : > { %v1162_v42 = vmul.f32 1.442695, %v1068_v29  ;;  %v1164_v61 = vmul.f32 1.442695, %v1069_v31  ;;  %1562 = vmatprep.subr.bf16.mxu0 %v1561_v32  ;;  %v1729_v14 = vpop.eup %1728 }
 0x31a   : > { %1564 = vmatpush1.bf16.xpose.msra.mxu0 %v1563_v54  ;;  %v992_v13 = vpop.xlane.xlu0 %991  ;;  %v1731_v43 = vpop.eup %1730 }
 0x31b   : > { %1740 = vpow2.f32 %v1162_v42  ;;  %v1070_v53 = vsub.f32 %v2248_v19, %v992_v13  ;;  %v1071_v62 = vsub.f32 %v2250_v20, %v992_v13 }
 0x31c   : > { %1742 = vpow2.f32 %v1164_v61 }
 0x31d   : > { %v1733_v35 = vpop.eup %1732  ;;  %v1166_v16 = vmul.f32 1.442695, %v1070_v53  ;;  %v1168_v17 = vmul.f32 1.442695, %v1071_v62 }
 0x31e   : > { %v1735_v59 = vpop.eup %1734  ;;  %v995_v60 = vpop.xlane.xlu1 %994  ;;  %v1567_v34 = vpack.c.bf16 %v1733_v35, %v1729_v14 }
 0x31f   : > { %v1072_v0 = vsub.f32 %v2254_v22, %v995_v60  ;;  %v1073_v51 = vsub.f32 %v2256_v23, %v995_v60  ;;  %v1565_v1 = vpack.c.bf16 %v1735_v59, %v1731_v43  ;;  %1744 = vpow2.f32 %v1166_v16 }
 0x320   : > { %1746 = vpow2.f32 %v1168_v17 }
 0x321   : > { %v1170_v2 = vmul.f32 1.442695, %v1072_v0  ;;  %v1172_v57 = vmul.f32 1.442695, %v1073_v51  ;;  %1566 = vmatprep.subr.bf16.mxu0 %v1565_v1  ;;  %v1737_v20 = vpop.eup %1736 }
 0x322   : > { %1568 = vmatpush1.bf16.xpose.msra.mxu0 %v1567_v34  ;;  %v998_v19 = vpop.xlane.xlu0 %997  ;;  %v1739_v27 = vpop.eup %1738 }
 0x323   : > { %1748 = vpow2.f32 %v1170_v2  ;;  %v1074_v45 = vsub.f32 %v2260_v25, %v998_v19  ;;  %v1075_v46 = vsub.f32 %v2262_v26, %v998_v19  ;;  %v2521_v2 = vld [vmem:[#allocation12_spill] sm:$0xff]  ;;  %v2522_v19 = vld [vmem:[#allocation13_spill] sm:$0xff] }
 0x324   : > { %1750 = vpow2.f32 %v1172_v57 }
 0x325   : > { %v1741_v4 = vpop.eup %1740  ;;  %v1174_v22 = vmul.f32 1.442695, %v1074_v45  ;;  %v1176_v23 = vmul.f32 1.442695, %v1075_v46 }
 0x326   : > { %v1743_v6 = vpop.eup %1742  ;;  %v1001_v5 = vpop.xlane.xlu1 %1000  ;;  %v1571_v36 = vpack.c.bf16 %v1741_v4, %v1737_v20  ;;  %v2523_v4 = vld [vmem:[#allocation14_spill] sm:$0xff] }
 0x327   : > { %v1076_v15 = vsub.f32 %v2266_v30, %v1001_v5  ;;  %v1077_v48 = vsub.f32 %v2268_v33, %v1001_v5  ;;  %v1569_v37 = vpack.c.bf16 %v1743_v6, %v1739_v27  ;;  %1752 = vpow2.f32 %v1174_v22  ;;  %v2524_v6 = vld [vmem:[#allocation15_spill] sm:$0xff] }
 0x328   : > { %1754 = vpow2.f32 %v1176_v23 }
 0x329   : > { %v1178_v49 = vmul.f32 1.442695, %v1076_v15  ;;  %v1180_v24 = vmul.f32 1.442695, %v1077_v48  ;;  %1570 = vmatprep.subr.bf16.mxu0 %v1569_v37  ;;  %v1745_v26 = vpop.eup %1744 }
 0x32a   : > { %1572 = vmatpush1.bf16.xpose.msra.mxu0 %v1571_v36  ;;  %v1004_v25 = vpop.xlane.xlu0 %1003  ;;  %v1747_v8 = vpop.eup %1746 }
 0x32b   : > { %1756 = vpow2.f32 %v1178_v49  ;;  %v1078_v44 = vsub.f32 %v2272_v38, %v1004_v25  ;;  %v1079_v7 = vsub.f32 %v2274_v41, %v1004_v25  ;;  %v2525_v25 = vld [vmem:[#allocation16_spill] sm:$0xff] }
 0x32c   : > { %1758 = vpow2.f32 %v1180_v24 }
 0x32d   : > { %v1749_v28 = vpop.eup %1748  ;;  %v1182_v30 = vmul.f32 1.442695, %v1078_v44  ;;  %v1184_v33 = vmul.f32 1.442695, %v1079_v7  ;;  %v2526_v44 = vld [vmem:[#allocation17_spill] sm:$0xff] }
 0x32e   : > { %v1751_v56 = vpop.eup %1750  ;;  %v1007_v39 = vpop.xlane.xlu1 %1006  ;;  %v1575_v40 = vpack.c.bf16 %v1749_v28, %v1745_v26 }
 0x32f   : > { %v1080_v10 = vsub.f32 %v2278_v47, %v1007_v39  ;;  %v1081_v55 = vsub.f32 %v2280_v50, %v1007_v39  ;;  %v1573_v11 = vpack.c.bf16 %v1751_v56, %v1747_v8  ;;  %1760 = vpow2.f32 %v1182_v30  ;;  %v2527_v39 = vld [vmem:[#allocation18_spill] sm:$0xff] }
 0x330   : > { %1762 = vpow2.f32 %v1184_v33 }
 0x331   : > { %v1186_v52 = vmul.f32 1.442695, %v1080_v10  ;;  %v1188_v54 = vmul.f32 1.442695, %v1081_v55  ;;  %1574 = vmatprep.subr.bf16.mxu0 %v1573_v11  ;;  %v1753_v41 = vpop.eup %1752  ;;  %v2528_v10 = vld [vmem:[#allocation19_spill] sm:$0xff] }
 0x332   : > { %1576 = vmatpush1.bf16.xpose.msra.mxu0 %v1575_v40  ;;  %v1010_v38 = vpop.xlane.xlu0 %1009  ;;  %v1755_v32 = vpop.eup %1754 }
 0x333   : > { %1764 = vpow2.f32 %v1186_v52  ;;  %v1082_v29 = vsub.f32 %v2284_v63, %v1010_v38  ;;  %v1083_v31 = vsub.f32 %v2286_v3, %v1010_v38 }
 0x334   : > { %1766 = vpow2.f32 %v1188_v54 }
 0x335   : > { %v1757_v42 = vpop.eup %1756  ;;  %v1190_v47 = vmul.f32 1.442695, %v1082_v29  ;;  %v1192_v50 = vmul.f32 1.442695, %v1083_v31 }
 0x336   : > { %v1759_v61 = vpop.eup %1758  ;;  %v1013_v13 = vpop.xlane.xlu1 %1012  ;;  %v1579_v14 = vpack.c.bf16 %v1757_v42, %v1753_v41 }
 0x337   : > { %v1084_v53 = vsub.f32 %v2290_v9, %v1013_v13  ;;  %v1085_v62 = vsub.f32 %v2292_v12, %v1013_v13  ;;  %v1577_v43 = vpack.c.bf16 %v1759_v61, %v1755_v32  ;;  %1768 = vpow2.f32 %v1190_v47  ;;  %v2529_v32 = vld [vmem:[#allocation20_spill] sm:$0xff]  ;;  %v2530_v47 = vld [vmem:[#allocation21_spill] sm:$0xff] }
 0x338   : > { %1770 = vpow2.f32 %v1192_v50 }
 0x339   : > { %v1194_v35 = vmul.f32 1.442695, %v1084_v53  ;;  %v1196_v16 = vmul.f32 1.442695, %v1085_v62  ;;  %1578 = vmatprep.subr.bf16.mxu0 %v1577_v43  ;;  %v1761_v3 = vpop.eup %1760  ;;  %v2531_v43 = vld [vmem:[#allocation22_spill] sm:$0xff] }
 0x33a   : > { %1580 = vmatpush1.bf16.xpose.msra.mxu0 %v1579_v14  ;;  %v1016_v63 = vpop.xlane.xlu0 %1015  ;;  %v1763_v60 = vpop.eup %1762 }
 0x33b   : > { %1772 = vpow2.f32 %v1194_v35  ;;  %v1086_v59 = vsub.f32 %v2296_v18, %v1016_v63  ;;  %v1087_v17 = vsub.f32 %v2298_v21, %v1016_v63 }
 0x33c   : > { %1774 = vpow2.f32 %v1196_v16  ;;  %v2532_v16 = vld [vmem:[#allocation23_spill] sm:$0xff] }
 0x33d   : > { %v1765_v34 = vpop.eup %1764  ;;  %v1198_v9 = vmul.f32 1.442695, %v1086_v59  ;;  %v1200_v12 = vmul.f32 1.442695, %v1087_v17 }
 0x33e   : > { %v1767_v0 = vpop.eup %1766  ;;  %v1019_v51 = vpop.xlane.xlu1 %1018  ;;  %v1583_v1 = vpack.c.bf16 %v1765_v34, %v1761_v3 }
 0x33f   : > { %v1088_v57 = vsub.f32 %v2521_v2, %v1019_v51  ;;  %v1089_v20 = vsub.f32 %v2522_v19, %v1019_v51  ;;  %v1581_v45 = vpack.c.bf16 %v1767_v0, %v1763_v60  ;;  %1776 = vpow2.f32 %v1198_v9  ;;  %v2533_v51 = vld [vmem:[#allocation24_spill] sm:$0xff] }
 0x340   : > { %1778 = vpow2.f32 %v1200_v12 }
 0x341   : > { %v1202_v46 = vmul.f32 1.442695, %v1088_v57  ;;  %v1204_v27 = vmul.f32 1.442695, %v1089_v20  ;;  %1582 = vmatprep.subr.bf16.mxu0 %v1581_v45  ;;  %v1769_v21 = vpop.eup %1768 }
 0x342   : > { %1584 = vmatpush1.bf16.xpose.msra.mxu0 %v1583_v1  ;;  %v1022_v18 = vpop.xlane.xlu0 %1021  ;;  %v1771_v5 = vpop.eup %1770 }
 0x343   : > { %1780 = vpow2.f32 %v1202_v46  ;;  %v1090_v22 = vsub.f32 %v2523_v4, %v1022_v18  ;;  %v1091_v23 = vsub.f32 %v2524_v6, %v1022_v18 }
 0x344   : > { %1782 = vpow2.f32 %v1204_v27 }
 0x345   : > { %v1773_v36 = vpop.eup %1772  ;;  %v1206_v15 = vmul.f32 1.442695, %v1090_v22  ;;  %v1208_v37 = vmul.f32 1.442695, %v1091_v23 }
 0x346   : > { %v1775_v48 = vpop.eup %1774  ;;  %v1025_v49 = vpop.xlane.xlu1 %1024  ;;  %v1587_v24 = vpack.c.bf16 %v1773_v36, %v1769_v21  ;;  %v2534_v36 = vld [vmem:[#allocation5_spill] sm:$0xff] }
 0x347   : > { %v1092_v26 = vsub.f32 %v2525_v25, %v1025_v49  ;;  %v1093_v7 = vsub.f32 %v2526_v44, %v1025_v49  ;;  %v1585_v8 = vpack.c.bf16 %v1775_v48, %v1771_v5  ;;  %1784 = vpow2.f32 %v1206_v15  ;;  %v2535_v15 = vld [vmem:[#allocation7_spill] sm:$0xff]  ;;  %v2536_v48 = vld [vmem:[#allocation6_spill] sm:$0xff]  ;;  %v2538_v49 = vld [vmem:[#allocation8_spill] sm:$0xff] }
 0x348   : > { %1786 = vpow2.f32 %v1208_v37  ;;  %v2537_v37 = vld [vmem:[#allocation9_spill] sm:$0xff]  ;;  %v2540_v25 = vld [vmem:[#allocation10_spill] sm:$0xff] }
 0x349   : > { %v1210_v28 = vmul.f32 1.442695, %v1092_v26  ;;  %v1212_v30 = vmul.f32 1.442695, %v1093_v7  ;;  %1586 = vmatprep.subr.bf16.mxu0 %v1585_v8  ;;  %v1777_v33 = vpop.eup %1776  ;;  %v1909_v26 = vmov 1.0  }
 0x34a   : > { %1588 = vmatpush1.bf16.xpose.msra.mxu0 %v1587_v24  ;;  %v1028_v56 = vpop.xlane.xlu0 %1027  ;;  %v1779_v11 = vpop.eup %1778  ;;  %v2539_v24 = vld [vmem:[#allocation11_spill] sm:$0xff] }
 0x34b   : > { %1788 = vpow2.f32 %v1210_v28  ;;  %v1094_v40 = vsub.f32 %v2527_v39, %v1028_v56  ;;  %v1095_v55 = vsub.f32 %v2528_v10, %v1028_v56  ;;  %v1327_v10 = vlaneseq }
 0x34c   : > { %1790 = vpow2.f32 %v1212_v30 }
 0x34d   : > { %v1781_v52 = vpop.eup %1780  ;;  %v1214_v54 = vmul.f32 1.442695, %v1094_v40  ;;  %v1216_v41 = vmul.f32 1.442695, %v1095_v55 }
 0x34e   : > { %v1783_v38 = vpop.eup %1782  ;;  %v1031_v29 = vpop.xlane.xlu1 %1030  ;;  %v1591_v31 = vpack.c.bf16 %v1781_v52, %v1777_v33 }
 0x34f   : > { %v1096_v42 = vsub.f32 %v2529_v32, %v1031_v29  ;;  %v1097_v61 = vsub.f32 %v2530_v47, %v1031_v29  ;;  %v1589_v50 = vpack.c.bf16 %v1783_v38, %v1779_v11  ;;  %1792 = vpow2.f32 %v1214_v54 }
 0x350   : > { %1794 = vpow2.f32 %v1216_v41  ;;  %v1328_v11 = vshrl.u32 %v1327_v10, 7 }
 0x351   : > { %v1218_v13 = vmul.f32 1.442695, %v1096_v42  ;;  %v1220_v14 = vmul.f32 1.442695, %v1097_v61  ;;  %1590 = vmatprep.subr.bf16.mxu0 %v1589_v50  ;;  %v1785_v62 = vpop.eup %1784 }
 0x352   : > { %1592 = vmatpush1.bf16.xpose.msra.mxu0 %v1591_v31  ;;  %v1034_v53 = vpop.xlane.xlu0 %1033  ;;  %v1787_v3 = vpop.eup %1786  ;;  %v1329_v52 = vsub.s32 0, %v1328_v11 }
 0x353   : > { %1796 = vpow2.f32 %v1218_v13  ;;  %v1098_v35 = vsub.f32 %v2531_v43, %v1034_v53  ;;  %v1099_v63 = vsub.f32 %v2532_v16, %v1034_v53 }
 0x354   : > { %1798 = vpow2.f32 %v1220_v14 }
 0x355   : > { %v1789_v59 = vpop.eup %1788  ;;  %v1222_v17 = vmul.f32 1.442695, %v1098_v35  ;;  %v1224_v34 = vmul.f32 1.442695, %v1099_v63 }
 0x356   : > { %v1791_v60 = vpop.eup %1790  ;;  %v1037_v9 = vpop.xlane.xlu1 %1036  ;;  %v1595_v0 = vpack.c.bf16 %v1789_v59, %v1785_v62 }
 0x357   : > { %v1100_v12 = vsub.f32 %v2338_v58, %v1037_v9  ;;  %v1101_v1 = vsub.f32 %v2533_v51, %v1037_v9  ;;  %v1593_v2 = vpack.c.bf16 %v1791_v60, %v1787_v3  ;;  %1800 = vpow2.f32 %v1222_v17 }
 0x358   : > { %1802 = vpow2.f32 %v1224_v34 }
 0x359   : > { %v1226_v57 = vmul.f32 1.442695, %v1100_v12  ;;  %v1228_v19 = vmul.f32 1.442695, %v1101_v1  ;;  %1594 = vmatprep.subr.bf16.mxu0 %v1593_v2  ;;  %v1793_v20 = vpop.eup %1792 }
 0x35a   : > { %1596 = vmatpush1.bf16.xpose.msra.mxu0 %v1595_v0  ;;  %v1795_v45 = vpop.eup %1794 }
 0x35b   : > { %1804 = vpow2.f32 %v1226_v57 }
 0x35c   : > { %1806 = vpow2.f32 %v1228_v19 }
 0x35d   : > { %v1797_v46 = vpop.eup %1796 }
 0x35e   : > { %v1799_v27 = vpop.eup %1798  ;;  %v1599_v18 = vpack.c.bf16 %v1797_v46, %v1793_v20 }
 0x35f   : > { %v1597_v21 = vpack.c.bf16 %v1799_v27, %v1795_v45 }
 0x361   : > { %1598 = vmatprep.subr.bf16.mxu0 %v1597_v21  ;;  %v1801_v58 = vpop.eup %1800 }
 0x362   : > { %1600 = vmatpush1.bf16.xpose.msra.mxu0 %v1599_v18  ;;  %v1803_v4 = vpop.eup %1802 }
 0x365   : > { %v1805_v22 = vpop.eup %1804 }
 0x366   : > { %v1807_v6 = vpop.eup %1806  ;;  %v1603_v23 = vpack.c.bf16 %v1805_v22, %v1801_v58 }
 0x367   : > { %v1601_v5 = vpack.c.bf16 %v1807_v6, %v1803_v4 }
 0x369   : > { %1602 = vmatprep.subr.bf16.mxu0 %v1601_v5 }
 0x36a   : > { %1604 = vmatpush1.bf16.xpose.msra.mxu0 %v1603_v23 }
 0x371   : > { %1295 = vmatmul.mubr.f32.vlgmr.msra.gmra.mrb[16].mxu0 %v2534_v36 }
 0x372   : > { %1300 = vmatprep.mubr.f32.mxu0 %v2535_v15 }
 0x375   : > { %1301 = vmatmul.mubr.f32.gmra.mrb[18].mxu0 %v2536_v48 }
 0x376   : > { %1306 = vmatprep.mubr.f32.mxu0 %v2537_v37 }
 0x379   : > { %1307 = vmatmul.mubr.f32.gmra.mrb[20].mxu0 %v2538_v49 }
 0x37a   : > { %1312 = vmatprep.mubr.f32.mxu0 %v2539_v24 }
 0x37d   : > { %1313 = vmatmul.mubr.f32.gmra.mrb[22].mxu0 %v2540_v25 }
 0x37e   : > { %1318 = vmatprep.mubr.f32.mxu0 %v1909_v26 }
 0x381   : > { %1319 = vmatmul.mubr.f32.gmra.mrb[24].mxu0 %v1909_v26 }
 0x444   : > { %v1296_v44 = vpop.f32.mrb[16].mxu0 }
 0x445   : > { %v1298_v7 = vpop.f32.mrb[17].mxu0 }
 0x448   : > { %v1302_v8 = vpop.f32.mrb[18].mxu0 }
 0x449   : > { %v1304_v28 = vpop.f32.mrb[19].mxu0 }
 0x44c   : > { %v1308_v30 = vpop.f32.mrb[20].mxu0 }
 0x44d   : > { %v1310_v56 = vpop.f32.mrb[21].mxu0 }
 0x450   : > { %v1314_v33 = vpop.f32.mrb[22].mxu0 }
 0x451   : > { %v1316_v39 = vpop.f32.mrb[23].mxu0 }
 0x454   : > { %v1320_v40 = vpop.f32.mrb[24].mxu0 }
 0x455   : > { %1808 = vrcp.f32 %v1320_v40  ;;  %v1322_v55 = vpop.f32.mrb[25].mxu0 }
 0x456   : > { %1810 = vrcp.f32 %v1322_v55 }
 0x45f   : > { %v1809_v54 = vpop.eup %1808 }
 0x460   : > { %v1811_v38 = vpop.eup %1810  ;;  %v1330_v41 = vrot.slane %v1809_v54, %v1329_v52 }
 0x461   : > { %v1334_v29 = vrot.slane %v1811_v38, %v1329_v52 }
 0x462   : > { %v1335_v31 = vmul.f32 %v1330_v41, %v1296_v44  ;;  %v1337_v32 = vmul.f32 %v1330_v41, %v1302_v8  ;;  %v1339_v42 = vmul.f32 %v1330_v41, %v1308_v30  ;;  %v1341_v47 = vmul.f32 %v1330_v41, %v1314_v33 }
 0x463   : > { %v1336_v61 = vmul.f32 %v1334_v29, %v1298_v7  ;;  %v1338_v50 = vmul.f32 %v1334_v29, %v1304_v28  ;;  %v1340_v13 = vmul.f32 %v1334_v29, %v1310_v56  ;;  %v1342_v14 = vmul.f32 %v1334_v29, %v1316_v39 }
 0x464   : > { %1343 = vst [vmem:[%s236_s5] sm:$0xff] %v1335_v31  ;;  %1345 = vst [vmem:[%s236_s5 + $0x10] sm:$0xff] %v1337_v32 }
 0x465   : > { %1347 = vst [vmem:[%s236_s5 + $0x20] sm:$0xff] %v1339_v42  ;;  %1349 = vst [vmem:[%s236_s5 + $0x30] sm:$0xff] %v1341_v47 }
 0x466   : > { %1344 = vst [vmem:[%s236_s5 + $0x8] sm:$0xff] %v1336_v61  ;;  %1346 = vst [vmem:[%s236_s5 + $0x18] sm:$0xff] %v1338_v50 }
 0x467   : > { %1348 = vst [vmem:[%s236_s5 + $0x28] sm:$0xff] %v1340_v13  ;;  %1350 = vst [vmem:[%s236_s5 + $0x38] sm:$0xff] %v1342_v14 }
 0x468   : > { %1825 = shalt.err (!%p1822_p9)
}
 0x469   : > { %s1826_s14 = scalar_lea.hbm %s2423_s11, 1024  ;;  %s1830_s27 = scalar_lea.hbm %s2485_s4, 4096 }
 0x46a   : > { %p1827_p10 = scmp.ne.s32.totalorder %s2423_s11, %s1826_s14  ;;  %p1831_p13 = scmp.lt.u32.totalorder %s2423_s11, %s2485_s4 }
 0x46b   : > { %p1832_p0 = scmp.lt.u32.totalorder %s1830_s27, %s1826_s14  ;;  %p1834_p2 = scmp.lt.u32.totalorder %s1826_s14, %s2423_s11 }
 0x46c   : > { %p1828_p11 = pnand %p1827_p10, %p1989_p3 }
 0x46d   : > { %p1833_p1 = por %p1832_p0, %p1831_p13 }
 0x46e   : > { %p1829_p12 = pneg %p1828_p11 }
 0x46f   : > { %p1835_p4 = por %p1834_p2, %p1833_p1 }
 0x471   : > { %p1836_p5 = pnand %p1835_p4, %p1829_p12 }
 0x473   : > { %1839 = shalt.err (!%p1836_p5)
}
 0x474   : > { %s1911_s9 = smov 256   ;;  %s1912_s10 = smov 16  }
 0x475   : > { %1605 = dma.vmem_to_hbm [thread:$0]  (%p1989_p3), %s2425_s6, 1024, %s2423_s11, %s2429_s19, %s1911_s9, %s1911_s9, %s1912_s10  }
 0x476 PF: > { %p1611_p6 = scmp.ge.s32.totalorder %s1906_s22, 2  ;;  %s1383_s8 = sand.u32 1, %s1878_s15  }
 0x477   : > { %s1384_s18 = scalar_lea.sflag [#allocation3], %s1383_s8 }
 0x478   : > { %p1608_p7 = pnand %p1611_p6, %p1998_p8 }
 0x47a   : > { %1873 = dma.done.wait (!%p1608_p7), %s1384_s18, 1024  }
 0x47b   : > { %1875 = vsyncadd (!%p1608_p7), %s1384_s18, 4294966272  ;;  %s17_s22 = sadd.s32 1, %s1906_s22   ;;  %s2541_s15 = smov %s1882_s16 }
 0x47c   : > { %p14_p9 = scmp.ge.s32.totalorder %s17_s22, 6   ;;  %s2542_s16 = smov %s1886_s17 }
 0x47d   : > { %s2543_s17 = smov %s2007_s7  ;;  %s2544_s18 = smov %s1898_s20 }
 0x47e   : > { %s2545_s19 = smov %s1902_s21  ;;  %s2546_s20 = smov %s2549_s25 }
 0x47f   : > { %s2547_s21 = smov %s2553_s26  ;;  %16 = sbr.rel (!%p14_p9) target bundleno = 5 (0x5), region = 77 }
 0x486   :  { %1389 = vsyncpa [#allocation3], 1 }
 0x487   :  { %1391 = vsyncpa [#allocation3 + $0x1], 1 }

</bundles_post_ra>
